<compile_context>
chip_gen: v7x
topology: tpu7x:2x2x1
jax: 0.10.0
libtpu: 0.0.40
codegen_flags: <defaults>
</compile_context>

<pallas_src>
import jax
import jax.numpy as jnp
from jax import lax
from jax.experimental import pallas as pl
from jax.experimental.pallas import tpu as pltpu


def _round_up(x: int, m: int) -> int:
    return ((x + m - 1) // m) * m


def _vmem_budget_bytes() -> int:
    """~75% of per-core VMEM; conservative 64 MiB assumption if query fails."""
    try:
        cap = int(pltpu.get_tpu_info().vmem_capacity_bytes)
    except Exception:
        cap = 64 << 20  # smallest per-core VMEM (v7x)
    return int(cap * 0.75)


# ----------------------------- one-hot MXU path ------------------------------

def _stylebank_onehot_kernel(wid_ref, bank_ref, out_ref):
    # wid_ref : (TILE_B, 1)             int32, VMEM
    # bank_ref: (num_styles, lat_pad)   VMEM-resident (constant index_map)
    # out_ref : (TILE_B, lat_pad)
    wid = wid_ref[...]                                        # (TILE_B, 1)
    num_styles = bank_ref.shape[0]
    style_ids = lax.broadcasted_iota(jnp.int32, (1, num_styles), 1)
    onehot = (wid == style_ids).astype(bank_ref.dtype)        # (TILE_B, S)
    # Exact selection: HIGHEST reconstructs f32 rows from the multi-pass bf16
    # decomposition; bf16 banks are exact in a single DEFAULT pass (fewer MXU
    # passes and half the resident-bank bytes if the caller stores bf16).
    precision = (lax.Precision.HIGHEST
                 if jnp.dtype(bank_ref.dtype) == jnp.dtype(jnp.float32)
                 else lax.Precision.DEFAULT)
    gathered = jnp.dot(onehot, bank_ref[...],
                       preferred_element_type=jnp.float32,
                       precision=precision)
    out_ref[...] = gathered.astype(out_ref.dtype)


def _run_onehot(wid2d, bank_p, tile_batch, vmem_limit, cost):
    padded, _ = wid2d.shape
    num_styles, lat_p = bank_p.shape
    grid = (padded // tile_batch,)

    def call(bank_pipeline_mode):
        bank_kwargs = ({} if bank_pipeline_mode is None
                       else {"pipeline_mode": bank_pipeline_mode})
        return pl.pallas_call(
            _stylebank_onehot_kernel,
            out_shape=jax.ShapeDtypeStruct((padded, lat_p), bank_p.dtype),
            grid_spec=pltpu.PrefetchScalarGridSpec(
                num_scalar_prefetch=0,
                grid=grid,
                in_specs=[
                    # Per-tile slice of ids (TILE_B % 8 == 0, last dim full).
                    pl.BlockSpec((tile_batch, 1), lambda i: (i, 0)),
                    # Full-extent bank, constant block index -> fetched once,
                    # kept VMEM-resident; single-buffered (never refetched).
                    pl.BlockSpec((num_styles, lat_p), lambda i: (0, 0),
                                 **bank_kwargs),
                ],
                out_specs=pl.BlockSpec((tile_batch, lat_p), lambda i: (i, 0)),
            ),
            compiler_params=pltpu.CompilerParams(
                # TODO(synk): on v7x use pltpu.CORE_PARALLEL (or an explicit
                # 2-core core_map) on this axis to split the batch across the
                # two TensorCores; plain "parallel" is a near no-op there.
                dimension_semantics=("parallel",),
                vmem_limit_bytes=vmem_limit,
            ),
            cost_estimate=cost,
        )(wid2d, bank_p)

    try:
        # Single-buffer the resident bank: halves the dominant VMEM consumer.
        return call(pl.Buffered(1))
    except Exception:
        # Fallback for jax versions where Buffered(1) is not accepted.
        return call(None)


# --------------------------- HBM DMA row-gather path -------------------------

_GATHER_ROWS_PER_STEP = 8   # row DMAs kept in flight per grid step


def _stylebank_gather_kernel(wid_ref, bank_ref, out_ref, buf_ref, sem_ref):
    # wid_ref : (padded,)              int32 scalar-prefetch, SMEM
    # bank_ref: (num_styles, lat_pad)  HBM (memory_space=pl.ANY)
    # out_ref : (ROWS, lat_pad)        VMEM output tile
    # buf_ref : (ROWS, lat_pad)        VMEM staging scratch
    # sem_ref : (ROWS,)                DMA semaphores
    rows = out_ref.shape[0]
    base = pl.program_id(0) * rows
    copies = []
    for r in range(rows):                     # static unroll, rows is small
        row_id = wid_ref[base + r]
        cp = pltpu.make_async_copy(
            bank_ref.at[pl.ds(row_id, 1)],    # (1, lat_pad) HBM row
            buf_ref.at[pl.ds(r, 1)],          # (1, lat_pad) VMEM row
            sem_ref.at[r])
        cp.start()
        copies.append(cp)
    for cp in copies:
        cp.wait()
    out_ref[...] = buf_ref[...]               # dense, lane-aligned store


def _run_gather(wid1d, bank_p, cost):
    padded = wid1d.shape[0]
    _, lat_p = bank_p.shape
    rows = _GATHER_ROWS_PER_STEP
    grid = (padded // rows,)

    return pl.pallas_call(
        _stylebank_gather_kernel,
        out_shape=jax.ShapeDtypeStruct((padded, lat_p), bank_p.dtype),
        grid_spec=pltpu.PrefetchScalarGridSpec(
            num_scalar_prefetch=1,
            grid=grid,
            in_specs=[pl.BlockSpec(memory_space=pl.ANY)],   # bank stays in HBM
            out_specs=pl.BlockSpec((rows, lat_p), lambda i, wid: (i, 0)),
            scratch_shapes=[
                pltpu.VMEM((rows, lat_p), bank_p.dtype),
                pltpu.SemaphoreType.DMA((rows,)),
            ],
        ),
        compiler_params=pltpu.CompilerParams(
            dimension_semantics=("arbitrary",),
        ),
        cost_estimate=cost,
    )(wid1d, bank_p)


# ----------------------------------- wrapper ---------------------------------

def style_bank_lookup(style_bank: jax.Array, writer_id: jax.Array, *,
                      tile_batch: int | None = None,
                      path: str = "auto") -> jax.Array:
    """Pallas equivalent of `style_bank[writer_id]`.

    path: "auto" | "onehot" | "gather" | "xla"
    """
    num_styles, latent_dim = style_bank.shape
    orig_shape = jnp.shape(writer_id)
    itemsize = jnp.dtype(style_bank.dtype).itemsize

    wid = jnp.asarray(writer_id, jnp.int32).reshape(-1)
    batch = wid.shape[0]
    # NOTE: PyTorch raises on out-of-range ids; we clamp so the kernel stays
    # well-defined for untrusted ids (padding rows also reuse id 0).
    wid = jnp.clip(wid, 0, num_styles - 1)

    lat_p = _round_up(latent_dim, 128)        # lane-dense output stores
    bank_p = style_bank if lat_p == latent_dim else jnp.pad(
        style_bank, ((0, 0), (0, lat_p - latent_dim)))
    bank_bytes = num_styles * lat_p * itemsize

    budget = _vmem_budget_bytes()
    slack = 2 << 20

    def onehot_footprint(tb):
        # bank single-buffered; output tile + id tile double-buffered.
        return bank_bytes + 2 * tb * (lat_p * itemsize + 4) + slack

    if path == "auto":
        if batch * latent_dim * itemsize < (32 << 10):
            path = "xla"       # tiny gather: pallas_call overhead dominates
        elif num_styles <= 2048 and onehot_footprint(8) <= budget:
            path = "onehot"    # bank fits VMEM-resident on this generation
        else:
            path = "gather"    # large bank: HBM row gather, no residency

    if path == "xla":
        out = jnp.take(style_bank, wid, axis=0)
        return out.reshape(orig_shape + (latent_dim,))

    if path == "onehot":
        if tile_batch is None:
            tile_batch = min(512, _round_up(batch, 8))
            while tile_batch > 8 and onehot_footprint(tile_batch) > budget:
                tile_batch //= 2
        tile_batch = max(8, (tile_batch // 8) * 8)
        padded = _round_up(batch, tile_batch)
        wid2d = jnp.pad(wid, (0, padded - batch)).reshape(padded, 1)
        vmem_limit = int(min(max(onehot_footprint(tile_batch), 16 << 20), budget))
        cost = pl.CostEstimate(
            flops=0, transcendentals=0,
            bytes_accessed=int(bank_bytes + padded * (lat_p * itemsize + 4)))
        out_flat = _run_onehot(wid2d, bank_p, tile_batch, vmem_limit, cost)
    elif path == "gather":
        padded = _round_up(batch, _GATHER_ROWS_PER_STEP)
        wid1d = jnp.pad(wid, (0, padded - batch))
        cost = pl.CostEstimate(
            flops=0, transcendentals=0,
            bytes_accessed=int(2 * padded * lat_p * itemsize + padded * 4))
        out_flat = _run_gather(wid1d, bank_p, cost)
    else:
        raise ValueError(f"unknown path: {path!r}")

    out_flat = out_flat[:batch, :latent_dim]
    return out_flat.reshape(orig_shape + (latent_dim,))


if __name__ == "__main__":
    key = jax.random.PRNGKey(0)
    k_bank, k_ids, k_bank2 = jax.random.split(key, 3)

    num_styles, latent_dim, batch = 8, 256, 4
    style_bank = jax.random.normal(k_bank, (num_styles, latent_dim), jnp.float32)
    writer_id = jax.random.randint(k_ids, (batch,), 0, num_styles, jnp.int32)
    ref = style_bank[writer_id]

    # 1) Resident-bank one-hot MXU path (default for small banks).
    out = jax.block_until_ready(
        style_bank_lookup(style_bank, writer_id, path="onehot"))
    assert out.shape == (batch, latent_dim) and out.dtype == style_bank.dtype
    assert jnp.allclose(out, ref, rtol=1e-6, atol=1e-6), "onehot path mismatch"

    # 2) HBM DMA row-gather path (used when the bank cannot stay VMEM-resident).
    out_g = jax.block_until_ready(
        style_bank_lookup(style_bank, writer_id, path="gather"))
    assert jnp.array_equal(out_g, ref), "gather path mismatch"

    # 3) Non-128-multiple latent_dim exercises the lane-padding wrapper.
    bank_192 = jax.random.normal(k_bank2, (num_styles, 192), jnp.float32)
    out_p = jax.block_until_ready(
        style_bank_lookup(bank_192, writer_id, path="onehot"))
    assert out_p.shape == (batch, 192)
    assert jnp.allclose(out_p, bank_192[writer_id], rtol=1e-6, atol=1e-6)

    # 4) Auto path (tiny workload -> XLA escape hatch) still matches.
    out_a = jax.block_until_ready(style_bank_lookup(style_bank, writer_id))
    assert jnp.array_equal(out_a, ref), "auto/xla path mismatch"

    print("KERNEL_OK")
</pallas_src>

<mosaic_0001>
module attributes {stable_mosaic.version = 11 : i64} {
  func.func @_stylebank_onehot_kernel(%arg0: i32, %arg1: memref<8x1xi32, #tpu.memory_space<vmem>>, %arg2: memref<8x256xf32, #tpu.memory_space<vmem>>, %arg3: memref<8x256xf32, #tpu.memory_space<vmem>>) attributes {dimension_semantics = [#tpu.dimension_semantics<parallel>], iteration_bounds = array<i64: 1>, scalar_prefetch = 0 : i64, scratch_operands = 0 : i64, tpu.core_type = #tpu.core_type<tc>, window_params = [{transform_indices = @transform_0, window_bounds = array<i64: 8, 1>}, {pipeline_mode = #tpu.pipeline_mode<synchronous>, transform_indices = @transform_1, window_bounds = array<i64: 8, 256>}, {transform_indices = @transform_2, window_bounds = array<i64: 8, 256>}]} {
    %c0 = arith.constant 0 : index
    %c0_0 = arith.constant 0 : index
    %0 = vector.load %arg1[%c0, %c0_0] : memref<8x1xi32, #tpu.memory_space<vmem>>, vector<8x1xi32>
    %1 = tpu.iota {dimensions = array<i32: 1>} : vector<1x8xi32>
    %2 = vector.broadcast %0 : vector<8x1xi32> to vector<8x8xi32>
    %3 = vector.broadcast %1 : vector<1x8xi32> to vector<8x8xi32>
    %4 = arith.cmpi eq, %2, %3 : vector<8x8xi32>
    %5 = arith.extui %4 : vector<8x8xi1> to vector<8x8xi32>
    %6 = arith.sitofp %5 : vector<8x8xi32> to vector<8x8xf32>
    %c0_1 = arith.constant 0 : index
    %c0_2 = arith.constant 0 : index
    %7 = vector.load %arg2[%c0_1, %c0_2] : memref<8x256xf32, #tpu.memory_space<vmem>>, vector<8x256xf32>
    %cst = arith.constant dense<0.000000e+00> : vector<8x256xf32>
    %8 = tpu.matmul %6, %7, %cst {dimension_numbers = #tpu.dot_dimension_numbers<[1], [0], [0], [1], [0, 0, 1, 1], [], []>, precision = #tpu.contract_precision<fp32>} : vector<8x8xf32>, vector<8x256xf32>, vector<8x256xf32> -> vector<8x256xf32>
    %c0_3 = arith.constant 0 : index
    %c0_4 = arith.constant 0 : index
    %9 = vector.load %arg3[%c0_3, %c0_4] : memref<8x256xf32, #tpu.memory_space<vmem>>, vector<8x256xf32>
    tpu.vector_store %arg3[%c0_3, %c0_4], %8 {strides = array<i32>} : memref<8x256xf32, #tpu.memory_space<vmem>>, vector<8x256xf32>,
    return
  }
  func.func @transform_0(%arg0: i32) -> (i32, i32) {
    %c0_i32 = arith.constant 0 : i32
    %c0_i32_0 = arith.constant 0 : i32
    return %arg0, %c0_i32 : i32, i32
  }
  func.func @transform_1(%arg0: i32) -> (i32, i32) {
    %c0_i32 = arith.constant 0 : i32
    %c0_i32_0 = arith.constant 0 : i32
    %c0_i32_1 = arith.constant 0 : i32
    return %c0_i32, %c0_i32_0 : i32, i32
  }
  func.func @transform_2(%arg0: i32) -> (i32, i32) {
    %c0_i32 = arith.constant 0 : i32
    %c0_i32_0 = arith.constant 0 : i32
    return %arg0, %c0_i32 : i32, i32
  }
}

module attributes {stable_mosaic.version = 11 : i64} {
  func.func @_stylebank_onehot_kernel(%arg0: i32, %arg1: memref<8x1xi32, #tpu.memory_space<vmem>>, %arg2: memref<8x256xf32, #tpu.memory_space<vmem>>, %arg3: memref<8x256xf32, #tpu.memory_space<vmem>>) attributes {dimension_semantics = [#tpu.dimension_semantics<parallel>], iteration_bounds = array<i64: 1>, scalar_prefetch = 0 : i64, scratch_operands = 0 : i64, tpu.core_type = #tpu.core_type<tc>, window_params = [{transform_indices = @transform_0, window_bounds = array<i64: 8, 1>}, {pipeline_mode = #tpu.pipeline_mode<synchronous>, transform_indices = @transform_1, window_bounds = array<i64: 8, 256>}, {transform_indices = @transform_2, window_bounds = array<i64: 8, 256>}]} {
    %c0 = arith.constant 0 : index
    %c0_0 = arith.constant 0 : index
    %0 = vector.load %arg1[%c0, %c0_0] : memref<8x1xi32, #tpu.memory_space<vmem>>, vector<8x1xi32>
    %1 = tpu.iota {dimensions = array<i32: 1>} : vector<1x8xi32>
    %2 = vector.broadcast %0 : vector<8x1xi32> to vector<8x8xi32>
    %3 = vector.broadcast %1 : vector<1x8xi32> to vector<8x8xi32>
    %4 = arith.cmpi eq, %2, %3 : vector<8x8xi32>
    %5 = arith.extui %4 : vector<8x8xi1> to vector<8x8xi32>
    %6 = arith.sitofp %5 : vector<8x8xi32> to vector<8x8xf32>
    %c0_1 = arith.constant 0 : index
    %c0_2 = arith.constant 0 : index
    %7 = vector.load %arg2[%c0_1, %c0_2] : memref<8x256xf32, #tpu.memory_space<vmem>>, vector<8x256xf32>
    %cst = arith.constant dense<0.000000e+00> : vector<8x256xf32>
    %8 = tpu.matmul %6, %7, %cst {dimension_numbers = #tpu.dot_dimension_numbers<[1], [0], [0], [1], [0, 0, 1, 1], [], []>, precision = #tpu.contract_precision<fp32>} : vector<8x8xf32>, vector<8x256xf32>, vector<8x256xf32> -> vector<8x256xf32>
    %c0_3 = arith.constant 0 : index
    %c0_4 = arith.constant 0 : index
    %9 = vector.load %arg3[%c0_3, %c0_4] : memref<8x256xf32, #tpu.memory_space<vmem>>, vector<8x256xf32>
    tpu.vector_store %arg3[%c0_3, %c0_4], %8 {strides = array<i32>} : memref<8x256xf32, #tpu.memory_space<vmem>>, vector<8x256xf32>,
    return
  }
  func.func @transform_0(%arg0: i32) -> (i32, i32) {
    %c0_i32 = arith.constant 0 : i32
    %c0_i32_0 = arith.constant 0 : i32
    return %arg0, %c0_i32 : i32, i32
  }
  func.func @transform_1(%arg0: i32) -> (i32, i32) {
    %c0_i32 = arith.constant 0 : i32
    %c0_i32_0 = arith.constant 0 : i32
    %c0_i32_1 = arith.constant 0 : i32
    return %c0_i32, %c0_i32_0 : i32, i32
  }
  func.func @transform_2(%arg0: i32) -> (i32, i32) {
    %c0_i32 = arith.constant 0 : i32
    %c0_i32_0 = arith.constant 0 : i32
    return %arg0, %c0_i32 : i32, i32
  }
}

</mosaic_0001>

<bundles_post_ra>
// kernel: tpu_custom_call.1
= control target key start
LH: loop header
LB: loop body
LE: loop exit
PB: predicated region body
PF: predicated region fallthrough
CT: control target
= control target key end

     0   :  { %7 = vsyncpa [#allocation3], 0  ;;  %s638_s0 = inlined_call_operand.vmem [shape: s32[8,1], index: 0, kind: input, shape index: {}]   ;;  %s639_s1 = inlined_call_operand.hbm [shape: f32[8,256], index: 1, kind: input, shape index: {}]   ;;  %s640_s2 = inlined_call_operand.hbm [shape: f32[8,256], index: 2, kind: output, shape index: {}]  }
   0x1   :  { %8 = vsyncpa [#allocation4], 0  ;;  %s588_s9 = smov [#allocation2]   ;;  %s540_s13 = scalar_lea.hbm %s639_s1, 256 }
   0x2   :  { %s17_s10 = sshll.u32 %s588_s9, 4  ;;  %p541_p0 = scmp.ne.s32.totalorder %s639_s1, %s540_s13  ;;  %s18_s10 = int_to_ptr.vmem [resolvable:$true] %s17_s10 }
   0x3   :  { %p544_p1 = scmp.lt.u32.totalorder %s540_s13, %s639_s1 }
   0x5   :  { %p546_p2 = pnand %p544_p1, %p541_p0 }
   0x7   :  { %549 = shalt.err (!%p546_p2)
}
   0x8   :  { %s550_s18 = scalar_lea.vmem %s18_s10, 256  ;;  %p555_p4 = scmp.lt.s32.totalorder %s18_s10, %s18_s10 }
   0x9   :  { %p551_p3 = scmp.ne.s32.totalorder %s18_s10, %s550_s18  ;;  %p556_p5 = scmp.lt.s32.totalorder %s550_s18, %s550_s18 }
   0xb   :  { %p557_p6 = por %p556_p5, %p555_p4 }
   0xd   :  { %p558_p7 = pnand %p557_p6, %p551_p3 }
   0xf   :  { %561 = shalt.err (!%p558_p7)
}
  0x10   :  { %20 = dma.hbm_to_vmem [thread:$0]  %s639_s1, 256, %s18_s10, [#allocation3]  }
  0x11   :  { %584 = dma.done.wait [#allocation3], 256  }
  0x12   :  { %585 = vsyncadd [#allocation3], 4294967040  ;;  %v589_v0 = vmov 0   ;;  %v590_v1 = vmov 0.0   ;;  %v24_v2 = vld [vmem:[%s638_s0] sm:$0xff]  ;;  %v34_v3 = vld [vmem:[#allocation2 + $0x8] sm:$0xff]  ;;  %v25_v11 = vlaneseq }
  0x13   :  { %539 = vset.pattern.permute.xlu0 %v589_v0  ;;  %342 = vmatprep.mubr.f32.mxu0 %v590_v1  ;;  %v39_v4 = vand.u32 4294901760, %v34_v3  ;;  %v33_v5 = vld [vmem:[#allocation2] sm:$0xff]  ;;  %vm35_vm0 = vcmask 64512   ;;  %s591_s0 = smov [#allocation5]  }
  0x14   :  { %105 = vmatprep.mubr.f32.mxu1 %v590_v1  ;;  %28 = vperm.xlu0 %539, %v24_v2   ;;  %v41_v6 = vand.u32 4294901760, %v33_v5  ;;  %v26_v12 = vand.u32 127, %v25_v11  ;;  %s512_s1 = sshll.u32 %s591_s0, 4  ;;  %s513_s1 = int_to_ptr.vmem [resolvable:$true] %s512_s1 }
  0x15   :  { %277 = vmatprep.subr.mxu0 %v39_v4  ;;  %40 = vmatprep.subr.mxu1 %v39_v4  ;;  %v118_v7 = vsub.f32 %v34_v3, %v39_v4  ;;  %s562_s23 = scalar_lea.vmem %s513_s1, 256  ;;  %p567_p9 = scmp.lt.s32.totalorder %s513_s1, %s513_s1 }
  0x16   :  { %279 = vmatpush1.msra.mxu0 %v41_v6  ;;  %42 = vmatpush1.msra.mxu1 %v41_v6  ;;  %v124_v13 = vsub.f32 %v33_v5, %v41_v6  ;;  %p563_p8 = scmp.ne.s32.totalorder %s513_s1, %s562_s23  ;;  %p568_p10 = scmp.lt.s32.totalorder %s562_s23, %s562_s23 }
  0x17   :  { %v119_v8 = vand.u32 4294901760, %v118_v7 }
  0x18   :  { %v125_v15 = vand.u32 4294901760, %v124_v13  ;;  %p569_p11 = por %p568_p10, %p567_p9 }
  0x19   :  { %v120_v9 = vsub.f32 %v118_v7, %v119_v8  ;;  %355 = vmatprep.subr.mxu0 %v119_v8 }
  0x1a   :  { %v126_v19 = vsub.f32 %v124_v13, %v125_v15  ;;  %p570_p12 = pnand %p569_p11, %p563_p8 }
  0x1b   :  { %v121_v10 = vand.u32 4294901760, %v120_v9 }
  0x1c   :  { %v127_v22 = vand.u32 4294901760, %v126_v19 }
  0x1d   :  { %122 = vmatprep.subr.mxu1 %v121_v10 }
  0x93   :  { %v29_v14 = vpop.permute.xlu0 %28 }
  0x94   :  { %vm30_vm1 = vcmp.eq.s32.totalorder %v29_v14, %v26_v12 }
  0x95   :  { %v521_v16 = vsel %vm30_vm1, 1.0, %v590_v1 }
  0x96   :  { %v37_v17 = vsel %vm35_vm0, %v521_v16, 0 }
  0x97   :  { %v107_v18 = vsub.f32 %v37_v17, %v37_v17 }
  0x99   :  { %v108_v20 = vand.u32 4294901760, %v107_v18 }
  0x9b   :  { %346 = vmatmul.mubr.f32.vlgmr.msra.gmra.mrb[0].mxu0 %v108_v20  ;;  %v109_v21 = vsub.f32 %v107_v18, %v108_v20 }
  0x9c   :  { %359 = vmatpush1.msra.mxu0 %v125_v15  ;;  %422 = vmatprep.mubr.f32.mxu0 %v590_v1 }
  0x9d   :  { %v110_v23 = vand.u32 4294901760, %v109_v21  ;;  %431 = vmatprep.subr.mxu0 %v39_v4 }
  0x9f   :  { %111 = vmatmul.mubr.f32.vlgmr.msra.gmra.mrb[0].mxu1 %v110_v23 }
  0xa0   :  { %128 = vmatpush1.msra.mxu1 %v127_v22  ;;  %191 = vmatprep.mubr.f32.mxu1 %v590_v1 }
  0xa1   :  { %201 = vmatprep.subr.mxu1 %v118_v7 }
  0xa3   :  { %523 = vmatmul.mubr.msk.f32.vlgmr.msra.gmra.mrb[0].mxu0 %vm35_vm0, %v521_v16 }
  0xa4   :  { %433 = vmatpush1.msra.mxu0 %v41_v6  ;;  %496 = vmatprep.mubr.f32.mxu0 %v590_v1 }
  0xa7   :  { %522 = vmatmul.mubr.msk.f32.vlgmr.msra.gmra.mrb[0].mxu1 %vm35_vm0, %v521_v16 }
  0xa8   :  { %204 = vmatpush1.msra.mxu1 %v124_v13  ;;  %267 = vmatprep.mubr.f32.mxu1 %v590_v1 }
  0xab   :  { %524 = vmatmul.mubr.msk.f32.vlgmr.msra.gmra.mrb[0].mxu0 %vm35_vm0, %v521_v16 }
  0xaf   :  { %270 = vmatmul.mubr.f32.vlgmr.msra.gmra.mrb[0].mxu1 %v107_v18 }
 0x17e   :  { %v499_v24 = vpop.f32.mrb[0].mxu0 }
 0x17f   :  { %v501_v25 = vpop.f32.mrb[1].mxu0 }
 0x182   :  { %v271_v26 = vpop.f32.mrb[0].mxu1 }
 0x183   :  { %v525_v27 = vadd.f32 %v499_v24, %v271_v26  ;;  %v273_v28 = vpop.f32.mrb[1].mxu1 }
 0x184   :  { %v526_v29 = vadd.f32 %v501_v25, %v273_v28 }
 0x185   :  { %504 = vst [vmem:[#allocation5] sm:$0xff] %v525_v27 }
 0x186   :  { %505 = vst [vmem:[#allocation5 + $0x8] sm:$0xff] %v526_v29 }
 0x187   :  { %573 = shalt.err (!%p570_p12)
}
 0x188   :  { %s574_s26 = scalar_lea.hbm %s640_s2, 256 }
 0x189   :  { %p575_p13 = scmp.ne.s32.totalorder %s640_s2, %s574_s26  ;;  %p578_p0 = scmp.lt.u32.totalorder %s574_s26, %s640_s2 }
 0x18b   :  { %p580_p1 = pnand %p578_p0, %p575_p13 }
 0x18d   :  { %583 = shalt.err (!%p580_p1)
}
 0x18e   :  { %515 = dma.vmem_to_hbm [thread:$0]  %s513_s1, 256, %s640_s2, [#allocation4]  }
 0x18f   :  { %586 = dma.done.wait [#allocation4], 256  }
 0x190   :  { %587 = vsyncadd [#allocation4], 4294967040 }
 0x191   :  { %519 = vsyncpa [#allocation3], 1 }
 0x192   :  { %520 = vsyncpa [#allocation4], 1 }

// kernel: tpu_custom_call.1
= control target key start
LH: loop header
LB: loop body
LE: loop exit
PB: predicated region body
PF: predicated region fallthrough
CT: control target
= control target key end

     0   :  { %7 = vsyncpa [#allocation3], 0  ;;  %s638_s0 = inlined_call_operand.vmem [shape: s32[8,1], index: 0, kind: input, shape index: {}]   ;;  %s639_s1 = inlined_call_operand.hbm [shape: f32[8,256], index: 1, kind: input, shape index: {}]   ;;  %s640_s2 = inlined_call_operand.hbm [shape: f32[8,256], index: 2, kind: output, shape index: {}]  }
   0x1   :  { %8 = vsyncpa [#allocation4], 0  ;;  %s588_s9 = smov [#allocation2]   ;;  %s540_s13 = scalar_lea.hbm %s639_s1, 256 }
   0x2   :  { %s17_s10 = sshll.u32 %s588_s9, 4  ;;  %p541_p0 = scmp.ne.s32.totalorder %s639_s1, %s540_s13  ;;  %s18_s10 = int_to_ptr.vmem [resolvable:$true] %s17_s10 }
   0x3   :  { %p544_p1 = scmp.lt.u32.totalorder %s540_s13, %s639_s1 }
   0x5   :  { %p546_p2 = pnand %p544_p1, %p541_p0 }
   0x7   :  { %549 = shalt.err (!%p546_p2)
}
   0x8   :  { %s550_s18 = scalar_lea.vmem %s18_s10, 256  ;;  %p555_p4 = scmp.lt.s32.totalorder %s18_s10, %s18_s10 }
   0x9   :  { %p551_p3 = scmp.ne.s32.totalorder %s18_s10, %s550_s18  ;;  %p556_p5 = scmp.lt.s32.totalorder %s550_s18, %s550_s18 }
   0xb   :  { %p557_p6 = por %p556_p5, %p555_p4 }
   0xd   :  { %p558_p7 = pnand %p557_p6, %p551_p3 }
   0xf   :  { %561 = shalt.err (!%p558_p7)
}
  0x10   :  { %20 = dma.hbm_to_vmem [thread:$0]  %s639_s1, 256, %s18_s10, [#allocation3]  }
  0x11   :  { %584 = dma.done.wait [#allocation3], 256  }
  0x12   :  { %585 = vsyncadd [#allocation3], 4294967040  ;;  %v589_v0 = vmov 0   ;;  %v590_v1 = vmov 0.0   ;;  %v24_v2 = vld [vmem:[%s638_s0] sm:$0xff]  ;;  %v34_v3 = vld [vmem:[#allocation2 + $0x8] sm:$0xff]  ;;  %v25_v11 = vlaneseq }
  0x13   :  { %539 = vset.pattern.permute.xlu0 %v589_v0  ;;  %342 = vmatprep.mubr.f32.mxu0 %v590_v1  ;;  %v39_v4 = vand.u32 4294901760, %v34_v3  ;;  %v33_v5 = vld [vmem:[#allocation2] sm:$0xff]  ;;  %vm35_vm0 = vcmask 64512   ;;  %s591_s0 = smov [#allocation5]  }
  0x14   :  { %105 = vmatprep.mubr.f32.mxu1 %v590_v1  ;;  %28 = vperm.xlu0 %539, %v24_v2   ;;  %v41_v6 = vand.u32 4294901760, %v33_v5  ;;  %v26_v12 = vand.u32 127, %v25_v11  ;;  %s512_s1 = sshll.u32 %s591_s0, 4  ;;  %s513_s1 = int_to_ptr.vmem [resolvable:$true] %s512_s1 }
  0x15   :  { %277 = vmatprep.subr.mxu0 %v39_v4  ;;  %40 = vmatprep.subr.mxu1 %v39_v4  ;;  %v118_v7 = vsub.f32 %v34_v3, %v39_v4  ;;  %s562_s23 = scalar_lea.vmem %s513_s1, 256  ;;  %p567_p9 = scmp.lt.s32.totalorder %s513_s1, %s513_s1 }
  0x16   :  { %279 = vmatpush1.msra.mxu0 %v41_v6  ;;  %42 = vmatpush1.msra.mxu1 %v41_v6  ;;  %v124_v13 = vsub.f32 %v33_v5, %v41_v6  ;;  %p563_p8 = scmp.ne.s32.totalorder %s513_s1, %s562_s23  ;;  %p568_p10 = scmp.lt.s32.totalorder %s562_s23, %s562_s23 }
  0x17   :  { %v119_v8 = vand.u32 4294901760, %v118_v7 }
  0x18   :  { %v125_v15 = vand.u32 4294901760, %v124_v13  ;;  %p569_p11 = por %p568_p10, %p567_p9 }
  0x19   :  { %v120_v9 = vsub.f32 %v118_v7, %v119_v8  ;;  %355 = vmatprep.subr.mxu0 %v119_v8 }
  0x1a   :  { %v126_v19 = vsub.f32 %v124_v13, %v125_v15  ;;  %p570_p12 = pnand %p569_p11, %p563_p8 }
  0x1b   :  { %v121_v10 = vand.u32 4294901760, %v120_v9 }
  0x1c   :  { %v127_v22 = vand.u32 4294901760, %v126_v19 }
  0x1d   :  { %122 = vmatprep.subr.mxu1 %v121_v10 }
  0x93   :  { %v29_v14 = vpop.permute.xlu0 %28 }
  0x94   :  { %vm30_vm1 = vcmp.eq.s32.totalorder %v29_v14, %v26_v12 }
  0x95   :  { %v521_v16 = vsel %vm30_vm1, 1.0, %v590_v1 }
  0x96   :  { %v37_v17 = vsel %vm35_vm0, %v521_v16, 0 }
  0x97   :  { %v107_v18 = vsub.f32 %v37_v17, %v37_v17 }
  0x99   :  { %v108_v20 = vand.u32 4294901760, %v107_v18 }
  0x9b   :  { %346 = vmatmul.mubr.f32.vlgmr.msra.gmra.mrb[0].mxu0 %v108_v20  ;;  %v109_v21 = vsub.f32 %v107_v18, %v108_v20 }
  0x9c   :  { %359 = vmatpush1.msra.mxu0 %v125_v15  ;;  %422 = vmatprep.mubr.f32.mxu0 %v590_v1 }
  0x9d   :  { %v110_v23 = vand.u32 4294901760, %v109_v21  ;;  %431 = vmatprep.subr.mxu0 %v39_v4 }
  0x9f   :  { %111 = vmatmul.mubr.f32.vlgmr.msra.gmra.mrb[0].mxu1 %v110_v23 }
  0xa0   :  { %128 = vmatpush1.msra.mxu1 %v127_v22  ;;  %191 = vmatprep.mubr.f32.mxu1 %v590_v1 }
  0xa1   :  { %201 = vmatprep.subr.mxu1 %v118_v7 }
  0xa3   :  { %523 = vmatmul.mubr.msk.f32.vlgmr.msra.gmra.mrb[0].mxu0 %vm35_vm0, %v521_v16 }
  0xa4   :  { %433 = vmatpush1.msra.mxu0 %v41_v6  ;;  %496 = vmatprep.mubr.f32.mxu0 %v590_v1 }
  0xa7   :  { %522 = vmatmul.mubr.msk.f32.vlgmr.msra.gmra.mrb[0].mxu1 %vm35_vm0, %v521_v16 }
  0xa8   :  { %204 = vmatpush1.msra.mxu1 %v124_v13  ;;  %267 = vmatprep.mubr.f32.mxu1 %v590_v1 }
  0xab   :  { %524 = vmatmul.mubr.msk.f32.vlgmr.msra.gmra.mrb[0].mxu0 %vm35_vm0, %v521_v16 }
  0xaf   :  { %270 = vmatmul.mubr.f32.vlgmr.msra.gmra.mrb[0].mxu1 %v107_v18 }
 0x17e   :  { %v499_v24 = vpop.f32.mrb[0].mxu0 }
 0x17f   :  { %v501_v25 = vpop.f32.mrb[1].mxu0 }
 0x182   :  { %v271_v26 = vpop.f32.mrb[0].mxu1 }
 0x183   :  { %v525_v27 = vadd.f32 %v499_v24, %v271_v26  ;;  %v273_v28 = vpop.f32.mrb[1].mxu1 }
 0x184   :  { %v526_v29 = vadd.f32 %v501_v25, %v273_v28 }
 0x185   :  { %504 = vst [vmem:[#allocation5] sm:$0xff] %v525_v27 }
 0x186   :  { %505 = vst [vmem:[#allocation5 + $0x8] sm:$0xff] %v526_v29 }
 0x187   :  { %573 = shalt.err (!%p570_p12)
}
 0x188   :  { %s574_s26 = scalar_lea.hbm %s640_s2, 256 }
 0x189   :  { %p575_p13 = scmp.ne.s32.totalorder %s640_s2, %s574_s26  ;;  %p578_p0 = scmp.lt.u32.totalorder %s574_s26, %s640_s2 }
 0x18b   :  { %p580_p1 = pnand %p578_p0, %p575_p13 }
 0x18d   :  { %583 = shalt.err (!%p580_p1)
}
 0x18e   :  { %515 = dma.vmem_to_hbm [thread:$0]  %s513_s1, 256, %s640_s2, [#allocation4]  }
 0x18f   :  { %586 = dma.done.wait [#allocation4], 256  }
 0x190   :  { %587 = vsyncadd [#allocation4], 4294967040 }
 0x191   :  { %519 = vsyncpa [#allocation3], 1 }
 0x192   :  { %520 = vsyncpa [#allocation4], 1 }

</bundles_post_ra>
